<compile_context>
chip_gen: v6e
topology: v6e:2x2x1
jax: 0.10.0
libtpu: 0.0.40
codegen_flags: <defaults>
</compile_context>

<pallas_src>
import jax
import jax.numpy as jnp
from jax.experimental import pallas as pl
from jax.experimental.pallas import tpu as pltpu


def _dot_first_token_kernel(anchor_ref, cand_ref, out_ref):
    # anchor_ref: (tb, 1, H)  -- each batch row's first token (wrapper-sliced)
    # cand_ref:   (tb, ts, H) -- current sequence tile (token 0 included)
    # out_ref:    (tb, ts)
    # Upcast only the tiny anchor; the multiply promotes the candidate block
    # per-vreg so no full f32 staging copy of the big block is materialized.
    anchor = anchor_ref[...].astype(jnp.float32)              # (tb, 1, H)
    prod = cand_ref[...] * anchor                              # (tb, ts, H) f32
    out_ref[...] = jnp.sum(prod, axis=-1, dtype=jnp.float32).astype(out_ref.dtype)


_TARGET_BLOCK_F32 = 2 << 20   # aim for >= ~2 MiB (f32 footprint) per grid step
_BUDGET_BLOCK_F32 = 4 << 20   # cap candidate block at ~4 MiB (f32 footprint)


def _choose_tiles(B, S, H, itemsize):
    """Pick (tb, ts). tb is a multiple of the sublane pack (or all of B); ts is
    S or a multiple of 128. Budgets are computed on the f32 footprint so the
    double-buffered block + f32 temporaries fit the scoped-VMEM limit on every
    generation (v5e 16/128 MiB, v6e 32/128 MiB, v7x 32/64 MiB)."""
    pack = 8 if itemsize >= 4 else (16 if itemsize == 2 else 32)
    row_f32 = S * H * 4
    if B < pack:
        tb = B
    else:
        tb_max = (B // pack) * pack          # keep tb <= B
        tb = pack
        while (tb + pack <= tb_max
               and (tb + pack) * row_f32 <= _BUDGET_BLOCK_F32
               and tb * row_f32 < _TARGET_BLOCK_F32):
            tb += pack
    if tb * row_f32 <= _BUDGET_BLOCK_F32 or S <= 256:
        ts = S
    else:
        ts = max(128, (_BUDGET_BLOCK_F32 // (tb * H * 4)) // 128 * 128)
        ts = int(min(ts, S))
    return tb, ts


def _vmem_limit_bytes():
    # 32 MiB is safely above this kernel's footprint, raises v5e's 16 MiB
    # scoped default, and is valid on v7x (only 64 MiB physical per TC).
    try:
        cap = pltpu.get_tpu_info().vmem_capacity_bytes
    except Exception:
        cap = 64 << 20
    return int(min(32 << 20, cap // 2))


def cosine_similarity(encoding: jax.Array) -> jax.Array:
    """encoding: (B, S, H) -> (B, S-1); out[b, s] = <enc[b, s+1], enc[b, 0]>."""
    B, S, H = encoding.shape
    itemsize = jnp.dtype(encoding.dtype).itemsize
    tb, ts = _choose_tiles(B, S, H, itemsize)

    # Tiny (B, 1, H) anchor slice (B*H elements) instead of re-fetching anchor
    # rows with every sequence tile; layout-legal for every dtype.
    anchor = encoding[:, 0:1, :]

    # No padding copy: boundary blocks are handled by Pallas masking.
    grid = (pl.cdiv(B, tb), pl.cdiv(S, ts))

    cost = pl.CostEstimate(
        flops=2 * B * S * H,
        transcendentals=0,
        bytes_accessed=(B * S * H + B * H + B * S) * itemsize,
    )

    out = pl.pallas_call(
        _dot_first_token_kernel,
        out_shape=jax.ShapeDtypeStruct((B, S), encoding.dtype),
        grid_spec=pltpu.PrefetchScalarGridSpec(
            num_scalar_prefetch=0,
            grid=grid,
            in_specs=[
                # First-token rows: index_map constant over s -> block stays
                # resident across the sequence axis, never re-fetched.
                pl.BlockSpec((tb, 1, H), lambda b, s: (b, 0, 0)),
                # Candidate tokens: current (batch, sequence) tile.
                pl.BlockSpec((tb, ts, H), lambda b, s: (b, s, 0)),
            ],
            out_specs=pl.BlockSpec((tb, ts), lambda b, s: (b, s)),
        ),
        compiler_params=pltpu.CompilerParams(
            dimension_semantics=("parallel", "arbitrary"),
            vmem_limit_bytes=_vmem_limit_bytes(),
        ),
        cost_estimate=cost,
    )(anchor, encoding)

    # Drop the token-0 self-dot column (PyTorch takes tokens 1:).
    return out[:, 1:]


def cosine_similarity_ref(encoding: jax.Array) -> jax.Array:
    """Pure-JAX reference mirroring the PyTorch forward (f32 accumulation)."""
    cands = encoding[:, 1:, :].astype(jnp.float32)   # (B, S-1, H)
    p = encoding[:, 0:1, :].astype(jnp.float32)      # (B, 1, H)
    return jnp.sum(cands * p, axis=-1).astype(encoding.dtype)


if __name__ == "__main__":
    # Small shape consistent with the module's (batch, seq, hidden) layout.
    B, S, H = 2, 8, 32
    key = jax.random.PRNGKey(0)
    encoding = jax.random.normal(key, (B, S, H), dtype=jnp.float32)

    out = jax.block_until_ready(cosine_similarity(encoding))
    ref = cosine_similarity_ref(encoding)
    assert out.shape == (B, S - 1), out.shape
    assert jnp.allclose(out, ref, atol=1e-5, rtol=1e-5)

    # Non-multiple batch (B=10, tb=8): exercises the pad-free boundary blocks.
    B2, S2, H2 = 10, 24, 64
    enc2 = jax.random.normal(jax.random.PRNGKey(0), (B2, S2, H2), dtype=jnp.float32)
    out2 = jax.block_until_ready(cosine_similarity(enc2))
    ref2 = cosine_similarity_ref(enc2)
    assert out2.shape == (B2, S2 - 1), out2.shape
    assert jnp.allclose(out2, ref2, atol=1e-4, rtol=1e-4)

    # bf16 path: dtype-aware pack (16) and f32 accumulation without a full
    # f32 staging copy of the candidate block.
    B3, S3, H3 = 16, 16, 128
    enc3 = jax.random.normal(jax.random.PRNGKey(0), (B3, S3, H3), dtype=jnp.float32)
    enc3 = enc3.astype(jnp.bfloat16)
    out3 = jax.block_until_ready(cosine_similarity(enc3))
    ref3 = cosine_similarity_ref(enc3)
    assert out3.shape == (B3, S3 - 1), out3.shape
    assert jnp.allclose(out3.astype(jnp.float32), ref3.astype(jnp.float32),
                        atol=5e-2, rtol=5e-2)

    print("KERNEL_OK")
</pallas_src>

<mosaic_0001>
module attributes {stable_mosaic.version = 11 : i64} {
  func.func @_dot_first_token_kernel(%arg0: i32, %arg1: i32, %arg2: memref<2x1x32xf32, #tpu.memory_space<vmem>>, %arg3: memref<2x8x32xf32, #tpu.memory_space<vmem>>, %arg4: memref<2x8xf32, #tpu.memory_space<vmem>>) attributes {dimension_semantics = [#tpu.dimension_semantics<parallel>, #tpu.dimension_semantics<arbitrary>], iteration_bounds = array<i64: 1, 1>, scalar_prefetch = 0 : i64, scratch_operands = 0 : i64, tpu.core_type = #tpu.core_type<tc>, window_params = [{transform_indices = @transform_0, window_bounds = array<i64: 2, 1, 32>}, {transform_indices = @transform_1, window_bounds = array<i64: 2, 8, 32>}, {transform_indices = @transform_2, window_bounds = array<i64: 2, 8>}]} {
    %c0 = arith.constant 0 : index
    %c0_0 = arith.constant 0 : index
    %c0_1 = arith.constant 0 : index
    %0 = vector.load %arg2[%c0, %c0_0, %c0_1] : memref<2x1x32xf32, #tpu.memory_space<vmem>>, vector<2x1x32xf32>
    %c0_2 = arith.constant 0 : index
    %c0_3 = arith.constant 0 : index
    %c0_4 = arith.constant 0 : index
    %1 = vector.load %arg3[%c0_2, %c0_3, %c0_4] : memref<2x8x32xf32, #tpu.memory_space<vmem>>, vector<2x8x32xf32>
    %2 = vector.broadcast %0 : vector<2x1x32xf32> to vector<2x8x32xf32>
    %3 = arith.mulf %1, %2 : vector<2x8x32xf32>
    %cst = arith.constant dense<0.000000e+00> : vector<2x8xf32>
    %4 = vector.multi_reduction <add>, %3, %cst [2] : vector<2x8x32xf32> to vector<2x8xf32>
    %c0_5 = arith.constant 0 : index
    %c0_6 = arith.constant 0 : index
    %5 = vector.load %arg4[%c0_5, %c0_6] : memref<2x8xf32, #tpu.memory_space<vmem>>, vector<2x8xf32>
    tpu.vector_store %arg4[%c0_5, %c0_6], %4 {strides = array<i32>} : memref<2x8xf32, #tpu.memory_space<vmem>>, vector<2x8xf32>,
    return
  }
  func.func @transform_0(%arg0: i32, %arg1: i32) -> (i32, i32, i32) {
    %c0_i32 = arith.constant 0 : i32
    %c0_i32_0 = arith.constant 0 : i32
    %c0_i32_1 = arith.constant 0 : i32
    return %arg0, %c0_i32, %c0_i32_0 : i32, i32, i32
  }
  func.func @transform_1(%arg0: i32, %arg1: i32) -> (i32, i32, i32) {
    %c0_i32 = arith.constant 0 : i32
    %c0_i32_0 = arith.constant 0 : i32
    return %arg0, %arg1, %c0_i32 : i32, i32, i32
  }
  func.func @transform_2(%arg0: i32, %arg1: i32) -> (i32, i32) {
    %c0_i32 = arith.constant 0 : i32
    return %arg0, %arg1 : i32, i32
  }
}

</mosaic_0001>

<bundles_post_ra>
// kernel: tpu_custom_call.1
= control target key start
LH: loop header
LB: loop body
LE: loop exit
PB: predicated region body
PF: predicated region fallthrough
CT: control target
= control target key end

     0   :  { %7 = vsyncpa [#allocation3], 0  ;;  %s204_s0 = inlined_call_operand.hbm [shape: f32[2,1,32], index: 0, kind: input, shape index: {}]   ;;  %s205_s1 = inlined_call_operand.hbm [shape: f32[2,8,32], index: 1, kind: input, shape index: {}]   ;;  %s206_s2 = inlined_call_operand.hbm [shape: f32[2,8], index: 2, kind: output, shape index: {}]  }
   0x1   :  { %8 = vsyncpa [#allocation6], 0 }
   0x2   :  { %9 = vsyncpa [#allocation4], 0  ;;  %s173_s9 = smov [#allocation2]  }
   0x3   :  { %s15_s10 = sshll.u32 %s173_s9, 4  ;;  %s16_s10 = int_to_ptr.vmem [resolvable:$true] %s15_s10 }
   0x4   :  { %s115_s11 = scalar_lea.vmem %s16_s10, 32  ;;  %p120_p1 = scmp.lt.s32.totalorder %s16_s10, %s16_s10 }
   0x5   :  { %p116_p0 = scmp.ne.s32.totalorder %s16_s10, %s115_s11  ;;  %p121_p2 = scmp.lt.s32.totalorder %s115_s11, %s115_s11 }
   0x7   :  { %p122_p3 = por %p121_p2, %p120_p1 }
   0x9   :  { %p123_p4 = pnand %p122_p3, %p116_p0 }
   0xb   :  { %126 = shalt.err (!%p123_p4)
}
   0xc   :  { %s174_s12 = smov 16   ;;  %s175_s13 = smov 1  }
   0xd   :  { %21 = dma.hbm_to_vmem [thread:$0]  %s204_s0, 32, %s16_s10, [#allocation3], %s174_s12, %s174_s12, %s175_s13  }
   0xe   :  { %s176_s16 = smov [#allocation5]  }
   0xf   :  { %s27_s17 = sshll.u32 %s176_s16, 4  ;;  %s28_s17 = int_to_ptr.vmem [resolvable:$true] %s27_s17 }
  0x10   :  { %s135_s18 = scalar_lea.vmem %s28_s17, 256  ;;  %p140_p6 = scmp.lt.s32.totalorder %s28_s17, %s28_s17 }
  0x11   :  { %p136_p5 = scmp.ne.s32.totalorder %s28_s17, %s135_s18  ;;  %p141_p7 = scmp.lt.s32.totalorder %s135_s18, %s135_s18 }
  0x13   :  { %p142_p8 = por %p141_p7, %p140_p6 }
  0x15   :  { %p143_p9 = pnand %p142_p8, %p136_p5 }
  0x17   :  { %146 = shalt.err (!%p143_p9)
}
  0x18   :  { %s177_s19 = smov 128   ;;  %s178_s20 = smov 8  }
  0x19   :  { %33 = dma.hbm_to_vmem [thread:$0]  %s205_s1, 256, %s28_s17, [#allocation6], %s177_s19, %s177_s19, %s178_s20  }
  0x1a   :  { %167 = dma.done.wait [#allocation3], 32  }
  0x1b   :  { %168 = vsyncadd [#allocation3], 4294967264 }
  0x1c   :  { %169 = dma.done.wait [#allocation6], 256  }
  0x1d   :  { %170 = vsyncadd [#allocation6], 4294967040  ;;  %v98_v0 = vld [vmem:[#allocation2] ss:$0 sm:$0xff]  ;;  %v42_v1 = vld [vmem:[#allocation5] sm:$0xff]  ;;  %vm58_vm0 = vcmask 261120   ;;  %v67_v8 = vlaneseq }
  0x1e   :  { %v99_v2 = vld [vmem:[#allocation2 + $0x1] ss:$0 sm:$0xff]  ;;  %v56_v3 = vmul.f32 %v98_v0, %v42_v1  ;;  %v43_v4 = vld [vmem:[#allocation5 + $0x8] sm:$0xff]  ;;  %s179_s0 = smov [#allocation7]   ;;  %vm77_vm1 = vcmask 1041409   ;;  %vm80_vm2 = vcmask 58368  }
  0x1f   :  { %v57_v5 = vmul.f32 %v99_v2, %v43_v4  ;;  %v68_v9 = vand.u32 127, %v67_v8  ;;  %v70_v10 = vshrl.u32 %v67_v8, 7  ;;  %s88_s1 = sshll.u32 %s179_s0, 4  ;;  %s89_s1 = int_to_ptr.vmem [resolvable:$true] %s88_s1 }
  0x20   :  { %v59_v6 = vsel %vm58_vm0, %v56_v3, 0.0  ;;  %s147_s23 = scalar_lea.vmem %s89_s1, 32  ;;  %p152_p11 = scmp.lt.s32.totalorder %s89_s1, %s89_s1 }
  0x21   :  { %60 = vadd.xlane.f32.xlu0 %v59_v6  ;;  %v62_v7 = vsel %vm58_vm0, %v57_v5, 0.0  ;;  %v71_v12 = vsub.s32 %v68_v9, %v70_v10  ;;  %p148_p10 = scmp.ne.s32.totalorder %s89_s1, %s147_s23  ;;  %p153_p12 = scmp.lt.s32.totalorder %s147_s23, %s147_s23 }
  0x23   :  { %p154_p13 = por %p153_p12, %p152_p11 }
  0x25   :  { %63 = vadd.xlane.f32.xlu0 %v62_v7  ;;  %p155_p0 = pnand %p154_p13, %p148_p10 }
  0xaa   :  { %v61_v11 = vpop.xlane.xlu0 %60 }
  0xab   :  { %v72_v14 = vrot.slane %v61_v11, %v71_v12 }
  0xae   :  { %v64_v13 = vpop.xlane.xlu0 %63 }
  0xaf   :  { %v76_v15 = vrot.slane %v64_v13, %v71_v12 }
  0xb1   :  { %v78_v16 = vsel %vm77_vm1, %v76_v15, %v72_v14 }
  0xb2   :  { %81 = vst.msk [vmem:[#allocation7] sm:$0x3] %vm80_vm2, %v78_v16 }
  0xb3   :  { %158 = shalt.err (!%p155_p0)
}
  0xb4   :  { %91 = dma.vmem_to_hbm [thread:$0]  %s89_s1, 32, %s206_s2, [#allocation4]  }
  0xb5   :  { %171 = dma.done.wait [#allocation4], 32  }
  0xb6   :  { %172 = vsyncadd [#allocation4], 4294967264 }
  0xb7   :  { %95 = vsyncpa [#allocation3], 1 }
  0xb8   :  { %96 = vsyncpa [#allocation6], 1 }
  0xb9   :  { %97 = vsyncpa [#allocation4], 1 }

</bundles_post_ra>
